<compile_context>
chip_gen: v5e
topology: v5e:2x2
jax: 0.10.0
libtpu: 0.0.40
codegen_flags: <defaults>
</compile_context>

<pallas_src>
import functools

import jax
import jax.numpy as jnp
from jax import lax
from jax.experimental import pallas as pl
from jax.experimental.pallas import tpu as pltpu


def _round_up(x, m):
    return (x + m - 1) // m * m


_VMEM_CAP = 48 * 2**20     # v7x-safe ceiling (64 MiB physical per TensorCore)
_VMEM_FLOOR = 16 * 2**20
_TILE_BUDGET = 40 * 2**20  # VMEM budget used when sizing tiles (headroom under cap)


def _vmem_limit(need_bytes):
    return int(min(_VMEM_CAP, max(int(1.25 * need_bytes), _VMEM_FLOOR)))


def _largest_divisor_tile(n, candidates):
    for c in candidates:
        if c <= n and n % c == 0:
            return c
    return n


def _pad_cast_2d(arr, rows, cols, dtype):
    """Pad/cast to (rows, cols, dtype). Fast path: already aligned -> no copy."""
    r, c = arr.shape
    if (r, c) == (rows, cols):
        return arr if arr.dtype == dtype else arr.astype(dtype)
    out = jnp.zeros((rows, cols), dtype)
    return out.at[:r, :c].set(arr.astype(dtype))


def _pad_rows(arr, rows):
    if arr.shape[0] == rows:
        return arr
    pad = [(0, rows - arr.shape[0])] + [(0, 0)] * (arr.ndim - 1)
    return jnp.pad(arr, pad)


# --------------------- vision projection + L2 normalize ----------------------
# grid = (Bp // tm, Fp // tk); K (reduction) axis last, f32 output block is the
# accumulator (resident across k since its block index is (i, 0) for all k).

def vision_proj_kernel(x_ref, w_ref, b_ref, out_ref):
    k = pl.program_id(1)

    @pl.when(k == 0)
    def _init():
        out_ref[...] = jnp.zeros_like(out_ref)

    # bf16 tiles in, f32 accumulation on the MXU, directly into the out block.
    out_ref[...] += jnp.dot(x_ref[...], w_ref[...],
                            preferred_element_type=jnp.float32)

    @pl.when(k == pl.num_programs(1) - 1)
    def _finalize():
        feat = out_ref[...] + b_ref[...]                       # f32
        # encode_image: output / (norm(output, dim=-1, keepdim=True) + 1e-8)
        # exact divide kept (epilogue-only) for f32 parity at 1e-3 tolerance.
        norm = jnp.sqrt(jnp.sum(feat * feat, axis=-1, keepdims=True))
        out_ref[...] = feat / (norm + 1e-8)


def _pick_tk(F):
    Fp = _round_up(F, 128)
    for c in (1024, 512, 256, 128):
        if c <= Fp and Fp % c == 0:
            return c, Fp
    return Fp, Fp


def _pick_tm(B, tk, Dp, budget_bytes=_TILE_BUDGET):
    """Largest MXU-aligned M tile whose VMEM footprint fits the budget."""
    Bmin = max(B, 8)
    per_row = 2 * Dp * 4 + 2 * tk * 2            # dbuf f32 out row + dbuf bf16 x row
    fixed = 2 * tk * Dp * 2 + 2 * Dp * 4         # dbuf bf16 weight tile + f32 bias
    max_rows = max(8, (budget_bytes - fixed) // per_row)
    align = 256 if Bmin >= 256 else 8            # full 256-row MXU tiles at real batch
    tm = min(_round_up(Bmin, align), max(align, (max_rows // align) * align))
    if Bmin >= 2 * align:                        # keep >=2 M tiles (v7x megacore)
        tm = min(tm, _round_up((Bmin + 1) // 2, align))
    return tm


def encode_image(images_nchw, w_v, b_v, *, Bp, Dp, tm, tk, Fp,
                 matmul_dtype=jnp.bfloat16):
    """Stand-in vision tower: linear projection of the flattened image + L2 norm.

    Returns a padded [Bp, Dp] f32 array: cols >= D are exactly zero; rows >= B
    contain bias-only garbage and MUST be masked downstream (the loss kernel
    does so via its row/col validity mask — never feed padded rows unmasked).
    """
    B = images_nchw.shape[0]
    F, D = w_v.shape
    x_flat = images_nchw.reshape(B, -1)
    assert x_flat.shape[1] == F

    x_p = _pad_cast_2d(x_flat, Bp, Fp, matmul_dtype)
    w_p = _pad_cast_2d(w_v, Fp, Dp, matmul_dtype)
    b_p = _pad_cast_2d(b_v.reshape(1, -1), 1, Dp, jnp.float32)

    bytes_in = jnp.dtype(matmul_dtype).itemsize
    vmem_need = (2 * (tm * tk + tk * Dp) * bytes_in   # double-buffered x / w tiles
                 + 2 * tm * Dp * 4                    # resident f32 out / accumulator
                 + 2 * Dp * 4)                        # bias

    return pl.pallas_call(
        vision_proj_kernel,
        out_shape=jax.ShapeDtypeStruct((Bp, Dp), jnp.float32),
        grid_spec=pltpu.PrefetchScalarGridSpec(
            num_scalar_prefetch=0,
            grid=(Bp // tm, Fp // tk),
            in_specs=[
                pl.BlockSpec((tm, tk), lambda i, k: (i, k)),
                pl.BlockSpec((tk, Dp), lambda i, k: (k, 0)),
                pl.BlockSpec((1, Dp), lambda i, k: (0, 0)),
            ],
            out_specs=pl.BlockSpec((tm, Dp), lambda i, k: (i, 0)),
        ),
        compiler_params=pltpu.CompilerParams(
            dimension_semantics=("parallel", "arbitrary"),
            vmem_limit_bytes=_vmem_limit(vmem_need),
        ),
    )(x_p, w_p, b_p)


# ------------- text: mean-pool + projection + L2 normalize (blocked over B) --

def text_encode_kernel(hid_ref, mask_ref, w_ref, b_ref, out_ref):
    # Up-cast native (possibly bf16) inputs in-kernel; all elementwise math f32
    # (v5e has no bf16 VALU/EUP), only the MXU operands are bf16.
    hid = hid_ref[...].astype(jnp.float32)                 # [tb, T, H]
    mask = mask_ref[...].astype(jnp.float32)               # [tb, T]

    summed = jnp.sum(hid * mask[:, :, None], axis=1)                 # [tb, H]
    denom = jnp.maximum(jnp.sum(mask, axis=1, keepdims=True), 1e-9)  # [tb, 1]
    pooled = summed / denom

    proj = jnp.dot(pooled.astype(jnp.bfloat16),
                   w_ref[...].astype(jnp.bfloat16),
                   preferred_element_type=jnp.float32) + b_ref[...]  # [tb, Dp] f32
    tnorm = jnp.sqrt(jnp.sum(proj * proj, axis=1, keepdims=True))
    out_ref[...] = proj / (tnorm + 1e-8)


def _pick_text_tb(Bp, T, H, Dp, hid_bytes, budget_bytes=_TILE_BUDGET):
    per_row = 2 * T * H * hid_bytes + 2 * T * 4 + 2 * Dp * 4   # dbuf hidden+mask+out
    fixed = H * Dp * 4 + Dp * 4
    max_rows = max(8, (budget_bytes - fixed) // per_row)
    for c in (512, 256, 128, 64, 32, 16, 8):
        if c <= Bp and c <= max_rows and Bp % c == 0:
            return c
    return 8


def encode_text(text_hidden, attention_mask, w_t, b_t, *, Bp, Dp):
    B, T, H = text_hidden.shape
    hid_bytes = jnp.dtype(text_hidden.dtype).itemsize
    tb = _pick_text_tb(Bp, T, H, Dp, hid_bytes)

    hid_p = _pad_rows(text_hidden, Bp)                    # native dtype, no up-cast
    mask_p = _pad_rows(attention_mask, Bp)                # padded rows -> zero mask
    w_p = _pad_cast_2d(w_t, H, Dp, w_t.dtype)             # fast path if D already 128-aligned
    b_p = _pad_cast_2d(b_t.reshape(1, -1), 1, Dp, jnp.float32)

    vmem_need = (2 * tb * T * H * hid_bytes
                 + 2 * tb * T * jnp.dtype(mask_p.dtype).itemsize
                 + H * Dp * jnp.dtype(w_p.dtype).itemsize
                 + Dp * 4 + 2 * tb * Dp * 4)

    return pl.pallas_call(
        text_encode_kernel,
        out_shape=jax.ShapeDtypeStruct((Bp, Dp), jnp.float32),
        grid_spec=pltpu.PrefetchScalarGridSpec(
            num_scalar_prefetch=0,
            grid=(Bp // tb,),
            in_specs=[
                pl.BlockSpec((tb, T, H), lambda i: (i, 0, 0)),
                pl.BlockSpec((tb, T), lambda i: (i, 0)),
                pl.BlockSpec((H, Dp), lambda i: (0, 0)),
                pl.BlockSpec((1, Dp), lambda i: (0, 0)),
            ],
            out_specs=pl.BlockSpec((tb, Dp), lambda i: (i, 0)),
        ),
        compiler_params=pltpu.CompilerParams(
            dimension_semantics=("parallel",),
            vmem_limit_bytes=_vmem_limit(vmem_need),
        ),
    )(hid_p, mask_p, w_p, b_p)


# ----------------- SigLIP sigmoid loss, blocked over (Bi, Bj) ----------------
# Logits are computed block-by-block on the MXU (bf16 embedding tiles, f32
# accumulation) and reduced to a running scalar in SMEM; the full [B,B] logits
# matrix never exists in HBM or VMEM.

def _siglip_loss_kernel(batch, tb, scale_ref, bias_ref, img_ref, txt_ref,
                        loss_ref, acc_ref):
    i = pl.program_id(0)
    j = pl.program_id(1)

    @pl.when((i == 0) & (j == 0))
    def _init():
        acc_ref[0, 0] = 0.0

    # Normalized embeddings (|x| <= 1) -> bf16 MXU operands are benign.
    img = img_ref[...].astype(jnp.bfloat16)                 # [tb, Dp]
    txt = txt_ref[...].astype(jnp.bfloat16)                 # [tb, Dp]
    # img @ txt.T without materializing a transpose: contract last dims.
    logits = lax.dot_general(img, txt, (((1,), (1,)), ((), ())),
                             preferred_element_type=jnp.float32)     # [tb, tb]
    logits = logits * jnp.exp(scale_ref[0]) + bias_ref[0]

    row = i * tb + lax.broadcasted_iota(jnp.int32, logits.shape, 0)
    col = j * tb + lax.broadcasted_iota(jnp.int32, logits.shape, 1)
    labels = jnp.where(row == col, 1.0, -1.0)               # global 2*eye(B) - 1
    valid = (row < batch) & (col < batch)                   # mask padded rows/cols
    z = labels * logits
    # loss = -sum(log_sigmoid(z)) / B ;  log_sigmoid(z) = -logaddexp(0, -z)
    acc_ref[0, 0] += jnp.sum(jnp.where(valid, jnp.logaddexp(0.0, -z), 0.0))

    # Unconditional scalar write: final grid step leaves the finished value.
    loss_ref[0, 0] = acc_ref[0, 0] / batch


def siglip_loss(img_emb, txt_emb, logit_scale, logit_bias, *, batch):
    Bp, Dp = img_emb.shape
    assert txt_emb.shape == (Bp, Dp)
    tb = _largest_divisor_tile(Bp, (512, 256, 128, 64, 32, 16, 8))
    nb = Bp // tb

    kernel = functools.partial(_siglip_loss_kernel, batch, tb)
    smem = pl.BlockSpec(memory_space=pltpu.MemorySpace.SMEM)
    vmem_need = 2 * (tb * Dp * 4) * 2 + tb * tb * 4

    loss = pl.pallas_call(
        kernel,
        out_shape=jax.ShapeDtypeStruct((1, 1), jnp.float32),
        grid_spec=pltpu.PrefetchScalarGridSpec(
            num_scalar_prefetch=0,
            grid=(nb, nb),
            in_specs=[
                smem,                                         # logit_scale
                smem,                                         # logit_bias
                pl.BlockSpec((tb, Dp), lambda i, j: (i, 0)),  # image block
                pl.BlockSpec((tb, Dp), lambda i, j: (j, 0)),  # text block
            ],
            out_specs=smem,
            scratch_shapes=[pltpu.SMEM((1, 1), jnp.float32)],
        ),
        compiler_params=pltpu.CompilerParams(
            dimension_semantics=("arbitrary", "arbitrary"),
            vmem_limit_bytes=_vmem_limit(vmem_need),
        ),
    )(logit_scale, logit_bias, img_emb, txt_emb)
    return loss[0, 0]


# --------------------------------- forward -----------------------------------

def siglip_forward(images, text_hidden, attention_mask, params):
    B = images.shape[0]
    F, D = params["w_v"].shape
    Dp = _round_up(D, 128)
    tk, Fp = _pick_tk(F)
    tm = _pick_tm(B, tk, Dp)
    Bp = _round_up(max(B, 8), tm)          # common padded batch for all kernels

    image_embed = encode_image(images, params["w_v"], params["b_v"],
                               Bp=Bp, Dp=Dp, tm=tm, tk=tk, Fp=Fp)
    text_embed = encode_text(text_hidden, attention_mask,
                             params["w_t"], params["b_t"], Bp=Bp, Dp=Dp)
    return siglip_loss(image_embed, text_embed,
                       params["logit_scale"], params["logit_bias"], batch=B)


# ----------------------------------- main -------------------------------------

if __name__ == "__main__":
    # Small shapes consistent with the forward pass.
    B, C, Himg, Wimg = 4, 3, 16, 16    # images NCHW
    T, H_TEXT = 8, 32                  # text seq length / text hidden size
    D = 128                            # projection_dim (768 in the real model)
    F = C * Himg * Wimg

    key = jax.random.PRNGKey(0)
    k_img, k_txt, k_wv, k_bv, k_wt, k_bt = jax.random.split(key, 6)

    images = jax.random.normal(k_img, (B, C, Himg, Wimg), jnp.float32)
    text_hidden = jax.random.normal(k_txt, (B, T, H_TEXT), jnp.float32)
    attention_mask = jnp.concatenate(
        [jnp.ones((B, T - 2), jnp.float32), jnp.zeros((B, 2), jnp.float32)], axis=1)

    init_scale, init_bias = 10.0, -10.0
    params = {
        # stand-in vision backbone (see TODO at top)
        "w_v": jax.random.normal(k_wv, (F, D), jnp.float32) * 0.02,
        "b_v": jax.random.normal(k_bv, (1, D), jnp.float32) * 0.02,
        # text_projection: nn.Linear(hidden, projection_dim)
        "w_t": jax.random.normal(k_wt, (H_TEXT, D), jnp.float32) * 0.02,
        "b_t": jax.random.normal(k_bt, (1, D), jnp.float32) * 0.02,
        # logit_scale = log(init_scale), logit_bias = init_bias  (shape (1,))
        "logit_scale": jnp.full((1,), jnp.log(init_scale), jnp.float32),
        "logit_bias": jnp.full((1,), init_bias, jnp.float32),
    }

    loss = siglip_forward(images, text_hidden, attention_mask, params)
    jax.block_until_ready(loss)

    # Pure-JAX reference (mirrors the kernels' bf16-MXU / f32-accumulate choices).
    def ref():
        x = images.reshape(B, -1)
        img = jnp.dot(x.astype(jnp.bfloat16), params["w_v"].astype(jnp.bfloat16),
                      preferred_element_type=jnp.float32) + params["b_v"]
        img = img / (jnp.linalg.norm(img, axis=-1, keepdims=True) + 1e-8)
        masked = text_hidden * attention_mask[:, :, None]
        pooled = masked.sum(1) / jnp.maximum(attention_mask.sum(1, keepdims=True), 1e-9)
        txt = jnp.dot(pooled.astype(jnp.bfloat16), params["w_t"].astype(jnp.bfloat16),
                      preferred_element_type=jnp.float32) + params["b_t"]
        txt = txt / (jnp.linalg.norm(txt, axis=1, keepdims=True) + 1e-8)
        logits = jnp.dot(img.astype(jnp.bfloat16), txt.astype(jnp.bfloat16).T,
                         preferred_element_type=jnp.float32)
        logits = logits * jnp.exp(params["logit_scale"][0]) + params["logit_bias"][0]
        labels = 2.0 * jnp.eye(B) - 1.0
        return -jnp.sum(jax.nn.log_sigmoid(labels * logits)) / B

    r = ref()
    assert jnp.allclose(loss, r, rtol=1e-3, atol=1e-3), (loss, r)
    print("KERNEL_OK")
</pallas_src>

<mosaic_0001>
module attributes {stable_mosaic.version = 11 : i64} {
  func.func @vision_proj_kernel(%arg0: i32, %arg1: i32, %arg2: memref<8x256xbf16, #tpu.memory_space<vmem>>, %arg3: memref<256x128xbf16, #tpu.memory_space<vmem>>, %arg4: memref<1x128xf32, #tpu.memory_space<vmem>>, %arg5: memref<8x128xf32, #tpu.memory_space<vmem>>) attributes {dimension_semantics = [#tpu.dimension_semantics<parallel>, #tpu.dimension_semantics<arbitrary>], iteration_bounds = array<i64: 1, 3>, scalar_prefetch = 0 : i64, scratch_operands = 0 : i64, tpu.core_type = #tpu.core_type<tc>, window_params = [{transform_indices = @transform_0, window_bounds = array<i64: 8, 256>}, {transform_indices = @transform_1, window_bounds = array<i64: 256, 128>}, {pipeline_mode = #tpu.pipeline_mode<synchronous>, transform_indices = @transform_2, window_bounds = array<i64: 1, 128>}, {transform_indices = @transform_3, window_bounds = array<i64: 8, 128>}]} {
    %c0_i32 = arith.constant 0 : i32
    %0 = arith.cmpi eq, %arg1, %c0_i32 : i32
    %1 = arith.extui %0 : i1 to i32
    %c0_i32_0 = arith.constant 0 : i32
    %2 = arith.cmpi ne, %1, %c0_i32_0 : i32
    scf.if %2 {
      %cst_9 = arith.constant 0.000000e+00 : f32
      %12 = vector.broadcast %cst_9 : f32 to vector<8x128xf32>
      %c0_10 = arith.constant 0 : index
      %c0_11 = arith.constant 0 : index
      %13 = vector.load %arg5[%c0_10, %c0_11] : memref<8x128xf32, #tpu.memory_space<vmem>>, vector<8x128xf32>
      tpu.vector_store %arg5[%c0_10, %c0_11], %12 {strides = array<i32>} : memref<8x128xf32, #tpu.memory_space<vmem>>, vector<8x128xf32>,
    } else {
    }
    %c0 = arith.constant 0 : index
    %c0_1 = arith.constant 0 : index
    %3 = vector.load %arg5[%c0, %c0_1] : memref<8x128xf32, #tpu.memory_space<vmem>>, vector<8x128xf32>
    %c0_2 = arith.constant 0 : index
    %c0_3 = arith.constant 0 : index
    %4 = vector.load %arg2[%c0_2, %c0_3] : memref<8x256xbf16, #tpu.memory_space<vmem>>, vector<8x256xbf16>
    %c0_4 = arith.constant 0 : index
    %c0_5 = arith.constant 0 : index
    %5 = vector.load %arg3[%c0_4, %c0_5] : memref<256x128xbf16, #tpu.memory_space<vmem>>, vector<256x128xbf16>
    %cst = arith.constant dense<0.000000e+00> : vector<8x128xf32>
    %6 = tpu.matmul %4, %5, %cst {dimension_numbers = #tpu.dot_dimension_numbers<[1], [0], [0], [1], [0, 0, 1, 1], [], []>} : vector<8x256xbf16>, vector<256x128xbf16>, vector<8x128xf32> -> vector<8x128xf32>
    %7 = arith.addf %3, %6 : vector<8x128xf32>
    %c0_6 = arith.constant 0 : index
    %c0_7 = arith.constant 0 : index
    %8 = vector.load %arg5[%c0_6, %c0_7] : memref<8x128xf32, #tpu.memory_space<vmem>>, vector<8x128xf32>
    tpu.vector_store %arg5[%c0_6, %c0_7], %7 {strides = array<i32>} : memref<8x128xf32, #tpu.memory_space<vmem>>, vector<8x128xf32>,
    %c2_i32 = arith.constant 2 : i32
    %9 = arith.cmpi eq, %arg1, %c2_i32 : i32
    %10 = arith.extui %9 : i1 to i32
    %c0_i32_8 = arith.constant 0 : i32
    %11 = arith.cmpi ne, %10, %c0_i32_8 : i32
    scf.if %11 {
      %c0_9 = arith.constant 0 : index
      %c0_10 = arith.constant 0 : index
      %12 = vector.load %arg5[%c0_9, %c0_10] : memref<8x128xf32, #tpu.memory_space<vmem>>, vector<8x128xf32>
      %c0_11 = arith.constant 0 : index
      %c0_12 = arith.constant 0 : index
      %13 = vector.load %arg4[%c0_11, %c0_12] : memref<1x128xf32, #tpu.memory_space<vmem>>, vector<1x128xf32>
      %14 = vector.broadcast %13 : vector<1x128xf32> to vector<8x128xf32>
      %15 = arith.addf %12, %14 : vector<8x128xf32>
      %16 = arith.mulf %15, %15 : vector<8x128xf32>
      %cst_13 = arith.constant dense<0.000000e+00> : vector<8xf32>
      %17 = vector.multi_reduction <add>, %16, %cst_13 [1] : vector<8x128xf32> to vector<8xf32>
      %18 = vector.shape_cast %17 : vector<8xf32> to vector<8x1xf32>
      %19 = math.sqrt %18 : vector<8x1xf32>
      %cst_14 = arith.constant 9.99999993E-9 : f32
      %20 = vector.broadcast %cst_14 : f32 to vector<8x1xf32>
      %21 = arith.addf %19, %20 : vector<8x1xf32>
      %22 = vector.broadcast %21 : vector<8x1xf32> to vector<8x128xf32>
      %23 = arith.divf %15, %22 : vector<8x128xf32>
      %c0_15 = arith.constant 0 : index
      %c0_16 = arith.constant 0 : index
      %24 = vector.load %arg5[%c0_15, %c0_16] : memref<8x128xf32, #tpu.memory_space<vmem>>, vector<8x128xf32>
      tpu.vector_store %arg5[%c0_15, %c0_16], %23 {strides = array<i32>} : memref<8x128xf32, #tpu.memory_space<vmem>>, vector<8x128xf32>,
    } else {
    }
    return
  }
  func.func @transform_0(%arg0: i32, %arg1: i32) -> (i32, i32) {
    %c0_i32 = arith.constant 0 : i32
    return %arg0, %arg1 : i32, i32
  }
  func.func @transform_1(%arg0: i32, %arg1: i32) -> (i32, i32) {
    %c0_i32 = arith.constant 0 : i32
    %c0_i32_0 = arith.constant 0 : i32
    return %arg1, %c0_i32 : i32, i32
  }
  func.func @transform_2(%arg0: i32, %arg1: i32) -> (i32, i32) {
    %c0_i32 = arith.constant 0 : i32
    %c0_i32_0 = arith.constant 0 : i32
    %c0_i32_1 = arith.constant 0 : i32
    return %c0_i32, %c0_i32_0 : i32, i32
  }
  func.func @transform_3(%arg0: i32, %arg1: i32) -> (i32, i32) {
    %c0_i32 = arith.constant 0 : i32
    %c0_i32_0 = arith.constant 0 : i32
    return %arg0, %c0_i32 : i32, i32
  }
}

</mosaic_0001>

<bundles_post_ra>
// kernel: tpu_custom_call.1
= control target key start
LH: loop header
LB: loop body
LE: loop exit
PB: predicated region body
PF: predicated region fallthrough
CT: control target
= control target key end

     0   :  { %8 = vsyncpa [#allocation3], 0  ;;  %s1037_s0 = inlined_call_operand.hbm [shape: bf16[8,768], index: 0, kind: input, shape index: {}]   ;;  %s1038_s1 = inlined_call_operand.hbm [shape: bf16[768,128], index: 1, kind: input, shape index: {}]   ;;  %s1039_s2 = inlined_call_operand.vmem [shape: f32[1,128], index: 2, kind: input, shape index: {}]   ;;  %s1040_s3 = inlined_call_operand.hbm [shape: f32[8,128], index: 3, kind: output, shape index: {}]  }
   0x1   :  { %10 = vsyncpa [#allocation3 + $0x1], 0 }
   0x2   :  { %11 = vsyncpa [#allocation6], 0 }
   0x3   :  { %13 = vsyncpa [#allocation6 + $0x1], 0 }
   0x4   :  { %14 = vsyncpa [#allocation4], 0  ;;  %s899_s12 = smov 0   ;;  %s901_s13 = smov 0  }
   0x5   :  { %s903_s14 = smov 0   ;;  %s905_s15 = smov 0  }
   0x6   :  { %s907_s16 = smov 0   ;;  %s909_s17 = smov 0  }
   0x7 LB: > { %s552_s18 = sadd.s32 4294967295, %s873_s17   ;;  %s29_s19 = sadd.s32 1, %s869_s16  ;;  %s873_s17 = sphi %s909_s17, %s20_s17   ;;  %s869_s16 = sphi %s907_s16, %s1048_s16   ;;  %s865_s15 = sphi %s905_s15, %s1047_s15   ;;  %s861_s14 = sphi %s903_s14, %s1046_s14   ;;  %s857_s13 = sphi %s901_s13, %s1045_s13   ;;  %s853_s12 = sphi %s899_s12, %s1044_s12  }
   0x8   : > { %p30_p0 = scmp.ge.s32.totalorder %s29_s19, 3  ;;  %s41_s20 = sadd.s32 1, %s861_s14 }
   0x9   : > { %p48_p1 = scmp.ne.s32.totalorder %s861_s14, %s857_s13  ;;  %p49_p2 = scmp.eq.s32.totalorder %s873_s17, 0 }
   0xa   : > { %s1050_s19 = smov (%p30_p0, %s29_s19), 0  ;;  %p54_p4 = scmp.ne.s32.totalorder %s857_s13, %s853_s12 }
   0xb   : > { %p935_p3 = por %p49_p2, %p48_p1  ;;  %s37_s22 = ssub.s32 %s869_s16, %s1050_s19 }
   0xc   : > { %p55_p5 = scmp.eq.s32.totalorder %s552_s18, 0  ;;  %p39_p6 = scmp.eq.s32.totalorder %s37_s22, 0 }
   0xd   : > { %p667_p8 = scmp.lt.s32.totalorder %s873_s17, 3  ;;  %s953_s25 = sand.u32 1, %s861_s14  }
   0xe   : > { %p944_p7 = por %p55_p5, %p54_p4  ;;  %s634_s26 = sshll.u32 %s869_s16, 3 }
   0xf   : > { %s950_s24 = scalar_select %p39_p6, %s861_s14, %s41_s20  }
  0x10   : > { %s555_s27 = sshll.u32 %s953_s25, 3  ;;  %s165_s30 = scalar_lea.hbm %s1037_s0, %s634_s26 }
  0x11   : > { %s167_s4 = sshll.u32 %s165_s30, 4  ;;  %s158_s5 = scalar_lea.vmem [#allocation2], %s555_s27  ;;  %s168_s4 = int_to_ptr.hbm [resolvable:$true] %s167_s4 }
  0x12   : > { %s169_s6 = sshll.u32 %s158_s5, 4  ;;  %p962_p9 = pnand %p667_p8, %p935_p3  ;;  %s170_s6 = int_to_ptr.vmem [resolvable:$true] %s169_s6 }
  0x13   : > { %p561_p10 = scmp.ge.s32.totalorder %s873_s17, 1  ;;  %p196_p11 = scmp.lt.s32.totalorder %s873_s17, 4 }
  0x14   : > { %s558_s8 = sshll.u32 %s953_s25, 7  ;;  %s155_s9 = scalar_lea.sflag [#allocation3], %s953_s25 }
  0x15   : > { %663 = dma.hbm_to_vmem [thread:$0]  (!%p962_p9), %s168_s4, 128, %s170_s6, %s155_s9  }
  0x16   : > { %p197_p12 = pnand %p561_p10, %p196_p11  ;;  %s635_s10 = sshll.u32 %s869_s16, 7 }
  0x17   : > { %s180_s11 = scalar_lea.vmem [#allocation5], %s558_s8  ;;  %s185_s21 = scalar_lea.hbm %s1038_s1, %s635_s10 }
  0x18   : > { %s188_s12 = sshll.u32 %s180_s11, 4  ;;  %s186_s26 = sshll.u32 %s185_s21, 4  ;;  %s189_s12 = int_to_ptr.vmem [resolvable:$true] %s188_s12  ;;  %s187_s26 = int_to_ptr.hbm [resolvable:$true] %s186_s26 }
  0x19   : > { %s177_s27 = scalar_lea.sflag [#allocation6], %s953_s25  ;;  %s875_s28 = smov 64  }
  0x1a   : > { %s876_s29 = smov 4   ;;  %200 = sbr.rel (%p197_p12) target bundleno = 384 (0x180), region = 32 }
  0x1b   : > { %666 = dma.hbm_to_vmem [thread:$0]  (!%p962_p9), %s187_s26, 2048, %s189_s12, %s177_s27, %s875_s28, %s875_s28, %s876_s29  }
  0x1c   : > { %s202_s30 = sand.u32 (!%p197_p12), 1, %s857_s13  }
  0x1d   : > { %s562_s4 = sshll.u32 (!%p197_p12), %s202_s30, 3  ;;  %s203_s5 = scalar_lea.sflag (!%p197_p12), [#allocation3], %s202_s30 }
  0x1e   : > { %s980_s6 = scalar_lea.vmem (!%p197_p12), [#allocation2], %s562_s4 }
  0x1f   : > { %840 = dma.done.wait (%p944_p7), %s203_s5, 128  }
  0x20   : > { %842 = vsyncadd (%p944_p7), %s203_s5, 4294967168  ;;  %s563_s8 = sshll.u32 %s202_s30, 7  ;;  %s213_s25 = scalar_lea.sflag [#allocation6], %s202_s30 }
  0x21   : > { %s986_s9 = scalar_lea.vmem [#allocation5], %s563_s8 }
  0x22   : > { %844 = dma.done.wait (%p944_p7), %s213_s25, 2048  }
  0x23   : > { %846 = vsyncadd (%p944_p7), %s213_s25, 4294965248  ;;  %p564_p13 = scmp.ne.s32.totalorder %s865_s15, 0 }
  0x25   : > { %245 = sbr.rel (%p564_p13) target bundleno = 44 (0x2c), region = 44 }
  0x2a   : > { %v877_v0 = vmov 0.0  }
  0x2b   : > { %246 = vst [vmem:[#allocation7] sm:$0xff] %v877_v0 }
  0x2c PF: > { %v643_v1 = vld [vmem:[%s986_s9 + $0x38] sm:$0xff]  ;;  %v642_v3 = vld [vmem:[%s986_s9 + $0x30] sm:$0xff]  ;;  %v641_v5 = vld [vmem:[%s986_s9 + $0x28] sm:$0xff]  ;;  %p629_p0 = scmp.ne.s32.totalorder %s865_s15, 2 }
  0x2d   : > { %v651_v2 = vld [vmem:[%s986_s9 + $0x78] sm:$0xff]  ;;  %384 = vmatpush.bf16.msra.mxu0 %v643_v1  ;;  %v650_v4 = vld [vmem:[%s986_s9 + $0x70] sm:$0xff]  ;;  %v649_v6 = vld [vmem:[%s986_s9 + $0x68] sm:$0xff] }
  0x2e   : > { %397 = vmatpush.bf16.msra.mxu1 %v651_v2  ;;  %v640_v7 = vld [vmem:[%s986_s9 + $0x20] sm:$0xff]  ;;  %v639_v9 = vld [vmem:[%s986_s9 + $0x18] sm:$0xff]  ;;  %v638_v11 = vld [vmem:[%s986_s9 + $0x10] sm:$0xff] }
  0x2f   : > { %v648_v8 = vld [vmem:[%s986_s9 + $0x60] sm:$0xff]  ;;  %v647_v10 = vld [vmem:[%s986_s9 + $0x58] sm:$0xff]  ;;  %v646_v12 = vld [vmem:[%s986_s9 + $0x50] sm:$0xff] }
  0x30   : > { %v637_v13 = vld [vmem:[%s986_s9 + $0x8] sm:$0xff]  ;;  %v248_v15 = vld [vmem:[%s980_s6] sm:$0xff]  ;;  %v636_v18 = vld [vmem:[%s986_s9] sm:$0xff] }
  0x31   : > { %385 = vmatpush.bf16.msra.mxu0 %v642_v3  ;;  %v645_v14 = vld [vmem:[%s986_s9 + $0x48] sm:$0xff]  ;;  %v282_v16 = vunpack.c.l.b16 %v248_v15  ;;  %v283_v17 = vunpack.c.h.b16 %v248_v15  ;;  %v644_v19 = vld [vmem:[%s986_s9 + $0x40] sm:$0xff] }
  0x32   : > { %398 = vmatpush.bf16.msra.mxu1 %v650_v4  ;;  %v247_v23 = vld [vmem:[#allocation7] sm:$0xff] }
  0x33   : > { %v284_v20 = vpack.c.b16 %v282_v16, %v282_v16  ;;  %v285_v21 = vpack.c.b16 %v283_v17, %v283_v17 }
  0x35   : > { %386 = vmatpush.bf16.msra.mxu0 %v641_v5 }
  0x36   : > { %399 = vmatpush.bf16.msra.mxu1 %v649_v6 }
  0x39   : > { %387 = vmatpush.bf16.msra.mxu0 %v640_v7 }
  0x3a   : > { %400 = vmatpush.bf16.msra.mxu1 %v648_v8 }
  0x3d   : > { %388 = vmatpush.bf16.msra.mxu0 %v639_v9 }
  0x3e   : > { %401 = vmatpush.bf16.msra.mxu1 %v647_v10 }
  0x41   : > { %389 = vmatpush.bf16.msra.mxu0 %v638_v11 }
  0x42   : > { %402 = vmatpush.bf16.msra.mxu1 %v646_v12 }
  0x45   : > { %390 = vmatpush.bf16.msra.mxu0 %v637_v13 }
  0x46   : > { %403 = vmatpush.bf16.msra.mxu1 %v645_v14 }
  0x49   : > { %391 = vmatpush.bf16.msra.mxu0 %v636_v18 }
  0x4a   : > { %404 = vmatpush.bf16.msra.mxu1 %v644_v19 }
  0x4c   : > { %392 = vmatmul.bf16.vlgmr.msra.gmra.mxu0 %v284_v20 }
  0x4d   : > { %405 = vmatmul.bf16.vlgmr.msra.gmra.mxu1 %v285_v21 }
  0xc9   : > { %v393_v22 = vpop.f32.mrf.mxu0 }
  0xca   : > { %v406_v24 = vpop.f32.mrf.mxu1 }
  0xcb   : > { %v407_v25 = vadd.f32 %v406_v24, %v393_v22 }
  0xcd   : > { %v410_v26 = vadd.f32 %v407_v25, %v247_v23 }
  0xce   : > { %415 = sbr.rel (%p629_p0) target bundleno = 378 (0x17a), region = 48 }
  0xcf   : > { %411 = vst [vmem:[#allocation7] sm:$0xff] %v410_v26 }
  0xd1   : > { %v395_v27 = vpop.f32.mrf.mxu0 }
  0xd2   : > { %v408_v28 = vpop.f32.mrf.mxu1 }
  0xd3   : > { %v722_v30 = vld [vmem:[%s1039_s2] ss:$0 sm:$0xff] }
  0xd6   : > { %v416_v29 = vld [vmem:[#allocation7] sm:$0xff] }
  0xd7   : > { %v421_v31 = vadd.f32 %v722_v30, %v416_v29 }
  0xd9   : > { %v422_v32 = vmul.f32 %v421_v31, %v421_v31 }
  0xdb   : > { %423 = vadd.xlane.f32.xlu0 %v422_v32 }
 0x14e   : > { %v424_v33 = vpop.xlane.xlu0 %423 }
 0x14f   : > { %723 = vrsqrt.f32 %v424_v33  ;;  %vm432_vm0 = vcmp.eq.f32.partialorder %v424_v33, inf  ;;  %v435_v41 = vand.u32 2147483648, %v424_v33  ;;  %vm434_vm1 = vcmp.eq.f32.partialorder %v424_v33, 0.0 }
 0x155   : > { %v724_v34 = vpop.eup %723 }
 0x156   : > { %v426_v35 = vmul.f32 %v724_v34, %v424_v33 }
 0x158   : > { %v427_v36 = vmul.f32 %v724_v34, %v426_v35 }
 0x15a   : > { %v428_v37 = vmul.f32 0.5, %v427_v36 }
 0x15c   : > { %v429_v38 = vsub.f32 1.5, %v428_v37 }
 0x15e   : > { %v430_v39 = vmul.f32 %v724_v34, %v429_v38 }
 0x160   : > { %v431_v40 = vmul.f32 %v430_v39, %v424_v33 }
 0x162   : > { %v433_v42 = vsel %vm432_vm0, %v424_v33, %v431_v40 }
 0x163   : > { %v436_v43 = vsel %vm434_vm1, %v435_v41, %v433_v42 }
 0x164   : > { %v437_v44 = vadd.f32 1e-08, %v436_v43 }
 0x166   : > { %725 = vrcp.f32 %v437_v44  ;;  %v449_v48 = vand.u32 2147483648, %v437_v44  ;;  %v447_v50 = vand.u32 2147483647, %v437_v44  ;;  %vm443_vm3 = vweird.f32 %v437_v44 }
 0x168   : > { %v450_v52 = vor.u32 1.1754944e-38, %v449_v48  ;;  %vm448_vm5 = vcmp.eq.f32.partialorder %v447_v50, 8.507059e+37 }
 0x16c   : > { %v726_v45 = vpop.eup %725 }
 0x16d   : > { %v439_v46 = vmul.f32 %v726_v45, %v437_v44  ;;  %vm444_vm2 = vweird.f32 %v726_v45 }
 0x16e   : > { %vm445_vm4 = vmor %vm443_vm3, %vm444_vm2 }
 0x16f   : > { %v440_v47 = vsub.f32 1.0, %v439_v46 }
 0x171   : > { %v441_v49 = vmul.f32 %v726_v45, %v440_v47 }
 0x173   : > { %v442_v51 = vadd.f32 %v726_v45, %v441_v49 }
 0x175   : > { %v446_v53 = vsel %vm445_vm4, %v726_v45, %v442_v51 }
 0x176   : > { %v451_v54 = vsel %vm448_vm5, %v450_v52, %v446_v53 }
 0x177   : > { %v452_v55 = vmul.f32 %v451_v54, %v421_v31 }
 0x179   : > { %453 = vst [vmem:[#allocation7] sm:$0xff] %v452_v55 }
 0x17a PF: > { %p668_p1 = scmp.eq.s32.totalorder %s552_s18, 2  ;;  %s464_s11 = sshll.u32 %s1040_s3, 4  ;;  %s465_s11 = int_to_ptr.hbm [resolvable:$true] %s464_s11 }
 0x17b   : > { %s878_s12 = smov [#allocation7]  }
 0x17c   : > { %s462_s20 = sshll.u32 %s878_s12, 4  ;;  %s463_s20 = int_to_ptr.vmem [resolvable:$true] %s462_s20 }
 0x17d   : > { %657 = dma.vmem_to_hbm [thread:$0]  (%p668_p1), %s463_s20, 128, %s465_s11, [#allocation4]  }
 0x17e   : > { %848 = dma.done.wait (%p668_p1), [#allocation4], 128  }
 0x17f   : > { %850 = vsyncadd (%p668_p1), [#allocation4], 4294967168 }
 0x180 PF: > { %s20_s17 = sadd.s32 1, %s873_s17   ;;  %s1044_s12 = smov %s857_s13 }
 0x181   : > { %p17_p2 = scmp.ge.s32.totalorder %s20_s17, 5   ;;  %s1045_s13 = smov %s861_s14 }
 0x182   : > { %s1046_s14 = smov %s950_s24  ;;  %s1047_s15 = smov %s869_s16 }
 0x183   : > { %s1048_s16 = smov %s1050_s19  ;;  %19 = sbr.rel (!%p17_p2) target bundleno = 7 (0x7), region = 91 }
 0x188   :  { %478 = vsyncpa [#allocation3], 1 }
 0x189   :  { %480 = vsyncpa [#allocation3 + $0x1], 1 }
 0x18a   :  { %481 = vsyncpa [#allocation6], 1 }
 0x18b   :  { %483 = vsyncpa [#allocation6 + $0x1], 1 }
 0x18c   :  { %484 = vsyncpa [#allocation4], 1 }
 0x18d   :  { %486 = vsyncpa [#allocation4 + $0x1], 1 }

</bundles_post_ra>
